<compile_context>
chip_gen: v6e
topology: v6e:2x2x1
jax: 0.10.0
libtpu: 0.0.40
codegen_flags: <defaults>
</compile_context>

<pallas_src>
import jax
import jax.numpy as jnp
from jax.experimental import pallas as pl
from jax.experimental.pallas import tpu as pltpu


# ----------------------------------------------------------------------------
# Kernel bodies
# ----------------------------------------------------------------------------
def _make_avg_kernel(l_total: int, l_tile: int, needs_mask: bool):
    inv_l = 1.0 / float(l_total)  # compile-time constant: multiply, don't divide

    def kernel(x_ref, o_ref, acc_ref):
        k = pl.program_id(2)

        @pl.when(k == 0)
        def _():
            acc_ref[...] = jnp.zeros(acc_ref.shape, acc_ref.dtype)

        x = x_ref[...].astype(jnp.float32)  # (Bt, Lt, Ct); no-op for f32 inputs
        if needs_mask:
            row = jax.lax.broadcasted_iota(jnp.int32, x.shape, 1)
            valid = l_total - k * l_tile
            x = jnp.where(row < valid, x, 0.0)  # zero out padded tail rows
        acc_ref[...] += jnp.sum(x, axis=1)

        @pl.when(k == pl.num_programs(2) - 1)
        def _():
            o_ref[...] = (acc_ref[...] * inv_l).astype(o_ref.dtype)

    return kernel


def _make_max_kernel(l_total: int, l_tile: int, needs_mask: bool, dtype):
    if jnp.issubdtype(dtype, jnp.floating):
        fill = float("-inf")
    else:
        fill = int(jnp.iinfo(dtype).min)

    def kernel(x_ref, o_ref, acc_ref):
        k = pl.program_id(2)

        @pl.when(k == 0)
        def _():
            acc_ref[...] = jnp.full(acc_ref.shape, fill, acc_ref.dtype)

        x = x_ref[...]  # (Bt, Lt, Ct) -- stay in native dtype; max is exact
        if needs_mask:
            row = jax.lax.broadcasted_iota(jnp.int32, x.shape, 1)
            valid = l_total - k * l_tile
            x = jnp.where(row < valid, x, jnp.asarray(fill, x.dtype))
        acc_ref[...] = jnp.maximum(acc_ref[...], jnp.max(x, axis=1))

        @pl.when(k == pl.num_programs(2) - 1)
        def _():
            o_ref[...] = acc_ref[...].astype(o_ref.dtype)

    return kernel


# ----------------------------------------------------------------------------
# Tile selection
# ----------------------------------------------------------------------------
_INPUT_BUFFER_BUDGET = 3 * 1024 * 1024  # ~3 MiB per buffer: HBM-roofline knee
_SMALL_INPUT_BYTES = 1 << 20            # below this, XLA's fused reduce wins


def _is_megacore() -> bool:
    """Best-effort detection of a multi-TensorCore-per-chip TPU (v7x)."""
    try:
        kind = jax.devices()[0].device_kind.lower()
    except Exception:
        return False
    return "v7" in kind or "7x" in kind


def _largest_aligned_divisor(n: int, align: int, upper: int):
    """Largest divisor of n that is a multiple of `align` and <= upper."""
    best = None
    d = 1
    while d * d <= n:
        if n % d == 0:
            for cand in (d, n // d):
                if cand % align == 0 and cand <= upper:
                    if best is None or cand > best:
                        best = cand
        d += 1
    return best


def _choose_tiles(B: int, L: int, C: int, itemsize: int):
    # Sublane packing granularity for the second-to-last block dim.
    sublane = {4: 8, 2: 16, 1: 32}.get(itemsize, 8)
    # Budget itemsize accounts for f32 widening / mask temporaries in-kernel.
    budget_itemsize = max(itemsize, 4)

    # Batch tile: full B if small (full-dim escape of the tiling rule), else a
    # sublane-aligned chunk (tail outputs are simply dropped).
    b_tile = B if B <= sublane else sublane
    b_grid = pl.cdiv(B, b_tile)

    # Channel tile.
    c_cap = _INPUT_BUFFER_BUDGET // (budget_itemsize * sublane * max(1, b_tile))
    c_cap = max(128, (c_cap // 128) * 128)
    if C <= c_cap:
        c_tile = C  # full-dim escape (also covers C % 128 != 0)
        # Megacore: if the B grid collapsed to 1, split C lane-aligned so the
        # second TensorCore has work on this mem-bound stream.
        if _is_megacore() and b_grid == 1 and C >= 256 and C % 256 == 0:
            c_tile = C // 2
    else:
        # Must tile along C: prefer a lane-aligned divisor of C, else a
        # lane-aligned tile (partial tail columns are dropped on writeback).
        div = _largest_aligned_divisor(C, 128, c_cap)
        c_tile = div if div is not None else c_cap

    # Sequence tile: largest sublane-aligned tile fitting the VMEM budget,
    # preferring an exact divisor of L so no per-step masking is needed.
    bytes_per_l_row = max(1, b_tile * c_tile * budget_itemsize)
    l_budget = max(sublane, _INPUT_BUFFER_BUDGET // bytes_per_l_row)
    if L <= l_budget:
        l_tile = L
    else:
        div = _largest_aligned_divisor(L, sublane, l_budget)
        l_tile = div if div is not None else max(sublane, (l_budget // sublane) * sublane)
    return b_tile, l_tile, c_tile, sublane


def _vmem_limit_bytes(b_tile: int, l_tile: int, c_tile: int, itemsize: int) -> int:
    block_elems = b_tile * l_tile * c_tile
    in_bytes = block_elems * itemsize          # input block
    tmp_bytes = block_elems * 4                # f32 widen / iota temporaries
    out_bytes = b_tile * c_tile * itemsize     # output block
    acc_bytes = b_tile * c_tile * 4            # accumulator scratch
    total = 2 * in_bytes + 2 * tmp_bytes + 2 * out_bytes + acc_bytes + (4 << 20)
    return int(min(max(total, 16 << 20), 48 << 20))


# ----------------------------------------------------------------------------
# Public wrapper
# ----------------------------------------------------------------------------
def pool(x: jax.Array, method: str = "avgpool", *,
         l_tile: int | None = None, force_pallas: bool = False) -> jax.Array:
    """Pallas equivalent of Pool(method).forward(x) with x of shape (B, L, C)."""
    if method not in ("avgpool", "maxpool"):
        raise NotImplementedError(f"Pooling method {method} not implemented")

    B, L, C = x.shape
    itemsize = jnp.dtype(x.dtype).itemsize

    # Tiny-input fallback: fixed pallas_call launch + per-step overhead would
    # dominate; XLA's fused reduce is strictly better here.
    if not force_pallas and B * L * C * itemsize < _SMALL_INPUT_BYTES:
        if method == "avgpool":
            return jnp.mean(x.astype(jnp.float32), axis=1).astype(x.dtype)
        return jnp.max(x, axis=1)

    b_tile, auto_l_tile, c_tile, sublane = _choose_tiles(B, L, C, itemsize)

    if l_tile is None:
        l_tile = auto_l_tile
    else:
        # Validate / round a user-supplied l_tile to the dtype's sublane
        # multiple (unless it covers the full L dimension).
        l_tile = int(l_tile)
        if l_tile >= L:
            l_tile = L
        else:
            l_tile = max(sublane, (l_tile // sublane) * sublane)
            l_tile = min(l_tile, L)
    needs_mask = (L % l_tile) != 0

    if method == "avgpool":
        kernel = _make_avg_kernel(L, l_tile, needs_mask)
        acc_scratch = pltpu.VMEM((b_tile, c_tile), jnp.float32)
    else:
        kernel = _make_max_kernel(L, l_tile, needs_mask, x.dtype)
        acc_scratch = pltpu.VMEM((b_tile, c_tile), x.dtype)

    grid = (pl.cdiv(B, b_tile), pl.cdiv(C, c_tile), pl.cdiv(L, l_tile))

    return pl.pallas_call(
        kernel,
        out_shape=jax.ShapeDtypeStruct((B, C), x.dtype),
        grid=grid,
        in_specs=[pl.BlockSpec((b_tile, l_tile, c_tile), lambda b, c, k: (b, k, c))],
        # Same output block across all L steps -> accumulator pattern, single
        # lane-dense writeback per (b, c) tile.
        out_specs=pl.BlockSpec((b_tile, c_tile), lambda b, c, k: (b, c)),
        scratch_shapes=[acc_scratch],
        compiler_params=pltpu.CompilerParams(
            dimension_semantics=("parallel", "parallel", "arbitrary"),
            vmem_limit_bytes=_vmem_limit_bytes(b_tile, l_tile, c_tile, itemsize)),
        cost_estimate=pl.CostEstimate(
            flops=B * L * C,
            transcendentals=0,
            bytes_accessed=(B * L * C + B * C) * itemsize),
    )(x)


# ----------------------------------------------------------------------------
# Self-test
# ----------------------------------------------------------------------------
if __name__ == "__main__":
    key = jax.random.PRNGKey(0)

    # Small shape matching the module's usage: (batch, seq, hidden).
    B, L, C = 2, 8, 32
    x = jax.random.normal(key, (B, L, C), dtype=jnp.float32)

    out_avg = jax.block_until_ready(pool(x, method="avgpool", force_pallas=True))
    out_max = jax.block_until_ready(pool(x, method="maxpool", force_pallas=True))
    ref_avg = jnp.mean(x, axis=1)
    ref_max = jnp.max(x, axis=1)
    assert out_avg.shape == (B, C) and out_max.shape == (B, C)
    assert jnp.allclose(out_avg, ref_avg, atol=1e-5, rtol=1e-5)
    assert jnp.allclose(out_max, ref_max)

    # Exercise the tiled-L reduction path (multi-step accumulator + tail mask).
    B2, L2, C2 = 2, 20, 128
    x2 = jax.random.normal(jax.random.PRNGKey(1), (B2, L2, C2), dtype=jnp.float32)
    out_avg2 = jax.block_until_ready(pool(x2, method="avgpool", l_tile=8, force_pallas=True))
    out_max2 = jax.block_until_ready(pool(x2, method="maxpool", l_tile=8, force_pallas=True))
    assert jnp.allclose(out_avg2, jnp.mean(x2, axis=1), atol=1e-5, rtol=1e-5)
    assert jnp.allclose(out_max2, jnp.max(x2, axis=1))

    # bf16 path: native-dtype max accumulator + sublane-16 rounding of l_tile.
    B3, L3, C3 = 4, 64, 256
    x3 = jax.random.normal(jax.random.PRNGKey(2), (B3, L3, C3), dtype=jnp.bfloat16)
    out_avg3 = jax.block_until_ready(pool(x3, method="avgpool", l_tile=16, force_pallas=True))
    out_max3 = jax.block_until_ready(pool(x3, method="maxpool", l_tile=8, force_pallas=True))
    ref_avg3 = jnp.mean(x3.astype(jnp.float32), axis=1).astype(jnp.bfloat16)
    assert jnp.allclose(out_avg3.astype(jnp.float32), ref_avg3.astype(jnp.float32),
                        atol=2e-2, rtol=2e-2)
    assert jnp.array_equal(out_max3, jnp.max(x3, axis=1))

    # Small-input fallback path (no pallas_call).
    out_fb = jax.block_until_ready(pool(x, method="avgpool"))
    assert jnp.allclose(out_fb, ref_avg, atol=1e-5, rtol=1e-5)

    print("KERNEL_OK")
</pallas_src>

<mosaic_0001>
module attributes {stable_mosaic.version = 11 : i64} {
  func.func @kernel(%arg0: i32, %arg1: i32, %arg2: i32, %arg3: memref<2x8x32xf32, #tpu.memory_space<vmem>>, %arg4: memref<2x32xf32, #tpu.memory_space<vmem>>, %arg5: memref<2x32xf32, #tpu.memory_space<vmem>>) attributes {dimension_semantics = [#tpu.dimension_semantics<parallel>, #tpu.dimension_semantics<parallel>, #tpu.dimension_semantics<arbitrary>], iteration_bounds = array<i64: 1, 1, 1>, scalar_prefetch = 0 : i64, scratch_operands = 1 : i64, tpu.core_type = #tpu.core_type<tc>, window_params = [{transform_indices = @transform_0, window_bounds = array<i64: 2, 8, 32>}, {transform_indices = @transform_1, window_bounds = array<i64: 2, 32>}]} {
    %c0_i32 = arith.constant 0 : i32
    %0 = arith.cmpi eq, %arg2, %c0_i32 : i32
    %1 = arith.extui %0 : i1 to i32
    %c0_i32_0 = arith.constant 0 : i32
    %2 = arith.cmpi ne, %1, %c0_i32_0 : i32
    scf.if %2 {
      %cst_9 = arith.constant 0.000000e+00 : f32
      %11 = vector.broadcast %cst_9 : f32 to vector<2x32xf32>
      %c0_10 = arith.constant 0 : index
      %c0_11 = arith.constant 0 : index
      %12 = vector.load %arg5[%c0_10, %c0_11] : memref<2x32xf32, #tpu.memory_space<vmem>>, vector<2x32xf32>
      tpu.vector_store %arg5[%c0_10, %c0_11], %11 {strides = array<i32>} : memref<2x32xf32, #tpu.memory_space<vmem>>, vector<2x32xf32>,
    } else {
    }
    %c0 = arith.constant 0 : index
    %c0_1 = arith.constant 0 : index
    %c0_2 = arith.constant 0 : index
    %3 = vector.load %arg3[%c0, %c0_1, %c0_2] : memref<2x8x32xf32, #tpu.memory_space<vmem>>, vector<2x8x32xf32>
    %c0_3 = arith.constant 0 : index
    %c0_4 = arith.constant 0 : index
    %4 = vector.load %arg5[%c0_3, %c0_4] : memref<2x32xf32, #tpu.memory_space<vmem>>, vector<2x32xf32>
    %cst = arith.constant dense<0.000000e+00> : vector<2x32xf32>
    %5 = vector.multi_reduction <add>, %3, %cst [1] : vector<2x8x32xf32> to vector<2x32xf32>
    %6 = arith.addf %4, %5 : vector<2x32xf32>
    %c0_5 = arith.constant 0 : index
    %c0_6 = arith.constant 0 : index
    %7 = vector.load %arg5[%c0_5, %c0_6] : memref<2x32xf32, #tpu.memory_space<vmem>>, vector<2x32xf32>
    tpu.vector_store %arg5[%c0_5, %c0_6], %6 {strides = array<i32>} : memref<2x32xf32, #tpu.memory_space<vmem>>, vector<2x32xf32>,
    %c0_i32_7 = arith.constant 0 : i32
    %8 = arith.cmpi eq, %arg2, %c0_i32_7 : i32
    %9 = arith.extui %8 : i1 to i32
    %c0_i32_8 = arith.constant 0 : i32
    %10 = arith.cmpi ne, %9, %c0_i32_8 : i32
    scf.if %10 {
      %c0_9 = arith.constant 0 : index
      %c0_10 = arith.constant 0 : index
      %11 = vector.load %arg5[%c0_9, %c0_10] : memref<2x32xf32, #tpu.memory_space<vmem>>, vector<2x32xf32>
      %cst_11 = arith.constant 1.250000e-01 : f32
      %12 = vector.broadcast %cst_11 : f32 to vector<2x32xf32>
      %13 = arith.mulf %11, %12 : vector<2x32xf32>
      %c0_12 = arith.constant 0 : index
      %c0_13 = arith.constant 0 : index
      %14 = vector.load %arg4[%c0_12, %c0_13] : memref<2x32xf32, #tpu.memory_space<vmem>>, vector<2x32xf32>
      tpu.vector_store %arg4[%c0_12, %c0_13], %13 {strides = array<i32>} : memref<2x32xf32, #tpu.memory_space<vmem>>, vector<2x32xf32>,
    } else {
    }
    return
  }
  func.func @transform_0(%arg0: i32, %arg1: i32, %arg2: i32) -> (i32, i32, i32) {
    %c0_i32 = arith.constant 0 : i32
    return %arg0, %arg2, %arg1 : i32, i32, i32
  }
  func.func @transform_1(%arg0: i32, %arg1: i32, %arg2: i32) -> (i32, i32) {
    %c0_i32 = arith.constant 0 : i32
    return %arg0, %arg1 : i32, i32
  }
}

</mosaic_0001>

<bundles_post_ra>
// kernel: tpu_custom_call.1
= control target key start
LH: loop header
LB: loop body
LE: loop exit
PB: predicated region body
PF: predicated region fallthrough
CT: control target
= control target key end

     0   :  { %6 = vsyncpa [#allocation4], 0  ;;  %s149_s0 = inlined_call_operand.hbm [shape: f32[2,8,32], index: 0, kind: input, shape index: {}]   ;;  %s150_s1 = inlined_call_operand.hbm [shape: f32[2,32], index: 1, kind: output, shape index: {}]  }
   0x1   :  { %7 = vsyncpa [#allocation5], 0  ;;  %s125_s6 = smov [#allocation3]  }
   0x2   :  { %s13_s7 = sshll.u32 %s125_s6, 4  ;;  %s14_s7 = int_to_ptr.vmem [resolvable:$true] %s13_s7 }
   0x3   :  { %s89_s8 = scalar_lea.vmem %s14_s7, 256  ;;  %p94_p1 = scmp.lt.s32.totalorder %s14_s7, %s14_s7 }
   0x4   :  { %p90_p0 = scmp.ne.s32.totalorder %s14_s7, %s89_s8  ;;  %p95_p2 = scmp.lt.s32.totalorder %s89_s8, %s89_s8 }
   0x6   :  { %p96_p3 = por %p95_p2, %p94_p1 }
   0x8   :  { %p97_p4 = pnand %p96_p3, %p90_p0 }
   0xa   :  { %100 = shalt.err (!%p97_p4)
}
   0xb   :  { %s126_s9 = smov 128   ;;  %s127_s10 = smov 8  }
   0xc   :  { %19 = dma.hbm_to_vmem [thread:$0]  %s149_s0, 256, %s14_s7, [#allocation4], %s126_s9, %s126_s9, %s127_s10  }
   0xd   :  { %121 = dma.done.wait [#allocation4], 256  }
   0xe   :  { %122 = vsyncadd [#allocation4], 4294967040  ;;  %vm27_vm0 = vcmask 254976   ;;  %v128_v0 = vmov 0.0   ;;  %vm32_vm1 = vcmask 261120   ;;  %v29_v1 = vld [vmem:[#allocation3] sm:$0xff] }
   0xf   :  { %28 = vst.msk [vmem:[#allocation2] sm:$0x3] %vm27_vm0, %v128_v0  ;;  %v30_v2 = vld [vmem:[#allocation3 + $0x8] sm:$0xff]  ;;  %v33_v3 = vsel %vm32_vm1, %v29_v1, 0.0  ;;  %vm49_vm2 = vcmask 1041409   ;;  %s129_s0 = smov [#allocation6]  }
  0x10   :  { %v40_v4 = vsel %vm32_vm1, %v30_v2, 0.0  ;;  %v34_v5 = vrot.slane %v33_v3, 4  ;;  %s67_s13 = sshll.u32 %s129_s0, 4  ;;  %s68_s13 = int_to_ptr.vmem [resolvable:$true] %s67_s13 }
  0x11   :  { %v41_v6 = vrot.slane %v40_v4, 4  ;;  %s101_s14 = scalar_lea.vmem %s68_s13, 32  ;;  %p106_p6 = scmp.lt.s32.totalorder %s68_s13, %s68_s13 }
  0x12   :  { %v35_v7 = vadd.f32 %v34_v5, %v33_v3  ;;  %p102_p5 = scmp.ne.s32.totalorder %s68_s13, %s101_s14  ;;  %p107_p7 = scmp.lt.s32.totalorder %s101_s14, %s101_s14 }
  0x13   :  { %v42_v8 = vadd.f32 %v41_v6, %v40_v4 }
  0x14   :  { %v36_v9 = vrot.slane %v35_v7, 2  ;;  %p108_p8 = por %p107_p7, %p106_p6 }
  0x15   :  { %v43_v10 = vrot.slane %v42_v8, 2 }
  0x16   :  { %v37_v11 = vadd.f32 %v36_v9, %v35_v7  ;;  %v31_v15 = vld [vmem:[#allocation2] sm:$0x3]  ;;  %p109_p9 = pnand %p108_p8, %p102_p5 }
  0x17   :  { %v44_v12 = vadd.f32 %v43_v10, %v42_v8 }
  0x18   :  { %v38_v13 = vrot.slane %v37_v11, 1 }
  0x19   :  { %v45_v14 = vrot.slane %v44_v12, 1 }
  0x1a   :  { %v39_v16 = vadd.f32 %v38_v13, %v37_v11 }
  0x1b   :  { %v46_v17 = vadd.f32 %v45_v14, %v44_v12 }
  0x1d   :  { %v50_v18 = vsel %vm49_vm2, %v46_v17, %v39_v16 }
  0x1e   :  { %v52_v19 = vadd.f32 %v50_v18, %v31_v15 }
  0x20   :  { %54 = vst.msk [vmem:[#allocation2] sm:$0x3] %vm27_vm0, %v52_v19 }
  0x27   :  { %v58_v20 = vld [vmem:[#allocation2] sm:$0x3] }
  0x28   :  { %v59_v21 = vmul.f32 0.125, %v58_v20 }
  0x2a   :  { %60 = vst.msk [vmem:[#allocation6] sm:$0x3] %vm27_vm0, %v59_v21 }
  0x2b   :  { %112 = shalt.err (!%p109_p9)
}
  0x2c   :  { %70 = dma.vmem_to_hbm [thread:$0]  %s68_s13, 32, %s150_s1, [#allocation5]  }
  0x2d   :  { %123 = dma.done.wait [#allocation5], 32  }
  0x2e   :  { %124 = vsyncadd [#allocation5], 4294967264 }
  0x2f   :  { %74 = vsyncpa [#allocation4], 1 }
  0x30   :  { %75 = vsyncpa [#allocation5], 1 }

</bundles_post_ra>
